<compile_context>
chip_gen: v7x
topology: tpu7x:2x2x1
jax: 0.10.0
libtpu: 0.0.40
codegen_flags: <defaults>
</compile_context>

<pallas_src>
import functools

import jax
import jax.numpy as jnp
from jax.experimental import pallas as pl
from jax.experimental.pallas import tpu as pltpu


def _instance_norm_vector_kernel(x_ref, o_ref, *, eps, hw):
    # x_ref block: (nb, C, HW) -- lane axis (HW) is the full, unpadded extent.
    x = x_ref[...].astype(jnp.float32)
    inv_hw = jnp.float32(1.0 / hw)

    mean = jnp.sum(x, axis=-1, keepdims=True) * inv_hw                 # (nb, C, 1)
    centered = x - mean
    var = jnp.sum(centered * centered, axis=-1, keepdims=True) * inv_hw  # (nb, C, 1)

    # Per-channel instance-norm scale.
    scale = jax.lax.rsqrt(var + jnp.float32(eps))                      # (nb, C, 1)

    # Closed-form per-sample L2 of the normalized slab:
    #   sum_{c,hw} xn^2 == HW * sum_c var/(var+eps) == HW * sum_c var*scale^2
    sq_sum = jnp.sum(var * scale * scale, axis=(1, 2), keepdims=True) * jnp.float32(hw)
    # 1 / max(sqrt(sq_sum), eps) == min(rsqrt(sq_sum), 1/eps); rsqrt(0)=inf -> 1/eps.
    inv_l2 = jnp.minimum(jax.lax.rsqrt(sq_sum), jnp.float32(1.0 / eps))  # (nb, 1, 1)

    # Single fused full-slab multiply; xn is never materialized separately.
    o_ref[...] = (centered * (scale * inv_l2)).astype(o_ref.dtype)


def _largest_divisor_leq(n, cap):
    cap = max(1, min(n, cap))
    for d in range(cap, 0, -1):
        if n % d == 0:
            return d
    return 1


def instance_norm_vector_2d(x, eps=1e-5):
    """x: (N, C, H, W) array. Returns array of same shape/dtype."""
    N, C, H, W = x.shape
    hw = H * W
    x_flat = x.reshape(N, C, hw)  # no padding: full-dim BlockSpec exemption below

    itemsize = jnp.dtype(x.dtype).itemsize

    # Physical VMEM (v5e/v6e 128 MiB, v7x 64 MiB); keep ~15% headroom.
    try:
        vmem_cap = int(pltpu.get_tpu_info().vmem_capacity_bytes)
    except Exception:
        vmem_cap = 64 << 20
    vmem_budget = int(vmem_cap * 0.85)

    # Per-sample VMEM cost per grid step:
    #   2x double-buffered input slab + 2x double-buffered output slab (native dtype)
    #   + two full f32 temporaries (x_f32, centered) live inside the kernel.
    per_sample_io = C * hw * itemsize
    per_sample_tmp = 2 * C * hw * 4
    per_sample_cost = 4 * per_sample_io + per_sample_tmp

    # How many batch samples fit per grid step.
    nb_cap = max(1, (vmem_budget - (2 << 20)) // max(per_sample_cost, 1))
    nb = _largest_divisor_leq(N, nb_cap)
    # Keep the parallel grid axis shardable across v7x's 2 TensorCores.
    if nb == N and N > 1:
        nb = _largest_divisor_leq(N, max(1, N // 2))
    # TODO(synk): if even nb=1 exceeds the VMEM budget (huge C*H*W on v7x),
    # switch to a C-tiled two-phase grid (stats pass + fused-store pass).

    kernel = functools.partial(_instance_norm_vector_kernel, eps=eps, hw=hw)

    per_step_bytes = nb * per_sample_cost
    vmem_bytes = int(per_step_bytes * 1.2) + (2 << 20)
    vmem_bytes = min(max(vmem_bytes, 8 << 20), vmem_budget)

    out_flat = pl.pallas_call(
        kernel,
        out_shape=jax.ShapeDtypeStruct((N, C, hw), x.dtype),
        grid_spec=pltpu.PrefetchScalarGridSpec(
            num_scalar_prefetch=0,
            grid=(N // nb,),
            # Last two block dims equal the full array dims -> (8,128) rule waived,
            # so no padding is ever needed regardless of C or H*W.
            in_specs=[pl.BlockSpec((nb, C, hw), lambda n: (n, 0, 0))],
            out_specs=pl.BlockSpec((nb, C, hw), lambda n: (n, 0, 0)),
        ),
        compiler_params=pltpu.CompilerParams(
            dimension_semantics=("parallel",),
            vmem_limit_bytes=vmem_bytes,
        ),
    )(x_flat)

    return out_flat.reshape(N, C, H, W)


def _reference(x, eps=1e-5):
    xf = x.astype(jnp.float32)
    mean = jnp.mean(xf, axis=(2, 3), keepdims=True)
    var = jnp.mean((xf - mean) ** 2, axis=(2, 3), keepdims=True)
    xn = (xf - mean) / jnp.sqrt(var + eps)
    nrm = jnp.sqrt(jnp.sum(xn * xn, axis=(1, 2, 3), keepdims=True))
    nrm = jnp.maximum(nrm, eps)
    return (xn / nrm).astype(x.dtype)


if __name__ == "__main__":
    key = jax.random.PRNGKey(0)
    N, C, H, W = 2, 4, 16, 16
    x = jax.random.normal(key, (N, C, H, W), dtype=jnp.float32)

    out = instance_norm_vector_2d(x, eps=1e-5)
    out = jax.block_until_ready(out)

    ref = _reference(x, eps=1e-5)
    assert out.shape == (N, C, H, W)
    assert jnp.allclose(out, ref, atol=1e-5, rtol=1e-5), "mismatch vs reference"

    print("KERNEL_OK")
</pallas_src>

<mosaic_0001>
module attributes {stable_mosaic.version = 11 : i64} {
  func.func @_instance_norm_vector_kernel(%arg0: i32, %arg1: memref<1x4x256xf32, #tpu.memory_space<vmem>>, %arg2: memref<1x4x256xf32, #tpu.memory_space<vmem>>) attributes {dimension_semantics = [#tpu.dimension_semantics<parallel>], iteration_bounds = array<i64: 2>, scalar_prefetch = 0 : i64, scratch_operands = 0 : i64, tpu.core_type = #tpu.core_type<tc>, window_params = [{transform_indices = @transform_0, window_bounds = array<i64: 1, 4, 256>}, {transform_indices = @transform_1, window_bounds = array<i64: 1, 4, 256>}]} {
    %c0 = arith.constant 0 : index
    %c0_0 = arith.constant 0 : index
    %c0_1 = arith.constant 0 : index
    %0 = vector.load %arg1[%c0, %c0_0, %c0_1] : memref<1x4x256xf32, #tpu.memory_space<vmem>>, vector<1x4x256xf32>
    %cst = arith.constant dense<0.000000e+00> : vector<1x4xf32>
    %1 = vector.multi_reduction <add>, %0, %cst [2] : vector<1x4x256xf32> to vector<1x4xf32>
    %2 = vector.shape_cast %1 : vector<1x4xf32> to vector<1x4x1xf32>
    %cst_2 = arith.constant 3.906250e-03 : f32
    %3 = vector.broadcast %cst_2 : f32 to vector<1x4x1xf32>
    %4 = arith.mulf %2, %3 : vector<1x4x1xf32>
    %5 = vector.broadcast %4 : vector<1x4x1xf32> to vector<1x4x256xf32>
    %6 = arith.subf %0, %5 : vector<1x4x256xf32>
    %7 = arith.mulf %6, %6 : vector<1x4x256xf32>
    %cst_3 = arith.constant dense<0.000000e+00> : vector<1x4xf32>
    %8 = vector.multi_reduction <add>, %7, %cst_3 [2] : vector<1x4x256xf32> to vector<1x4xf32>
    %9 = vector.shape_cast %8 : vector<1x4xf32> to vector<1x4x1xf32>
    %cst_4 = arith.constant 3.906250e-03 : f32
    %10 = vector.broadcast %cst_4 : f32 to vector<1x4x1xf32>
    %11 = arith.mulf %9, %10 : vector<1x4x1xf32>
    %cst_5 = arith.constant 9.99999974E-6 : f32
    %12 = vector.broadcast %cst_5 : f32 to vector<1x4x1xf32>
    %13 = arith.addf %11, %12 : vector<1x4x1xf32>
    %14 = math.rsqrt %13 : vector<1x4x1xf32>
    %15 = arith.mulf %11, %14 : vector<1x4x1xf32>
    %16 = arith.mulf %15, %14 : vector<1x4x1xf32>
    %cst_6 = arith.constant dense<0.000000e+00> : vector<1xf32>
    %17 = vector.multi_reduction <add>, %16, %cst_6 [1, 2] : vector<1x4x1xf32> to vector<1xf32>
    %18 = vector.shape_cast %17 : vector<1xf32> to vector<1x1x1xf32>
    %cst_7 = arith.constant 2.560000e+02 : f32
    %19 = vector.broadcast %cst_7 : f32 to vector<1x1x1xf32>
    %20 = arith.mulf %18, %19 : vector<1x1x1xf32>
    %21 = math.rsqrt %20 : vector<1x1x1xf32>
    %cst_8 = arith.constant 1.000000e+05 : f32
    %22 = vector.broadcast %cst_8 : f32 to vector<1x1x1xf32>
    %23 = arith.minimumf %21, %22 : vector<1x1x1xf32>
    %24 = vector.broadcast %23 : vector<1x1x1xf32> to vector<1x4x1xf32>
    %25 = arith.mulf %14, %24 : vector<1x4x1xf32>
    %26 = vector.broadcast %25 : vector<1x4x1xf32> to vector<1x4x256xf32>
    %27 = arith.mulf %6, %26 : vector<1x4x256xf32>
    %c0_9 = arith.constant 0 : index
    %c0_10 = arith.constant 0 : index
    %c0_11 = arith.constant 0 : index
    %28 = vector.load %arg2[%c0_9, %c0_10, %c0_11] : memref<1x4x256xf32, #tpu.memory_space<vmem>>, vector<1x4x256xf32>
    tpu.vector_store %arg2[%c0_9, %c0_10, %c0_11], %27 {strides = array<i32>} : memref<1x4x256xf32, #tpu.memory_space<vmem>>, vector<1x4x256xf32>,
    return
  }
  func.func @transform_0(%arg0: i32) -> (i32, i32, i32) {
    %c0_i32 = arith.constant 0 : i32
    %c0_i32_0 = arith.constant 0 : i32
    %c0_i32_1 = arith.constant 0 : i32
    return %arg0, %c0_i32, %c0_i32_0 : i32, i32, i32
  }
  func.func @transform_1(%arg0: i32) -> (i32, i32, i32) {
    %c0_i32 = arith.constant 0 : i32
    %c0_i32_0 = arith.constant 0 : i32
    %c0_i32_1 = arith.constant 0 : i32
    return %arg0, %c0_i32, %c0_i32_0 : i32, i32, i32
  }
}

</mosaic_0001>

<bundles_post_ra>
// kernel: tpu_custom_call.1
= control target key start
LH: loop header
LB: loop body
LE: loop exit
PB: predicated region body
PF: predicated region fallthrough
CT: control target
= control target key end

     0   :  { %6 = vsyncpa [#allocation3], 0  ;;  %s626_s0 = inlined_call_operand.hbm [shape: f32[2,4,256], index: 0, kind: input, shape index: {}]   ;;  %s627_s1 = inlined_call_operand.hbm [shape: f32[2,4,256], index: 1, kind: output, shape index: {}]  }
   0x1   :  { %8 = vsyncpa [#allocation3 + $0x1], 0 }
   0x2   :  { %9 = vsyncpa [#allocation4], 0 }
   0x3   :  { %11 = vsyncpa [#allocation4 + $0x1], 0  ;;  %s457_s6 = smov 0   ;;  %s459_s7 = smov 0  }
   0x4   :  { %s461_s8 = smov 0   ;;  %s463_s9 = smov 0  }
   0x5 LB: > { %s478_s10 = sadd.s32 4294967295, %s442_s9   ;;  %s278_s11 = sadd.s32 4294967294, %s442_s9   ;;  %s442_s9 = sphi %s463_s9, %s642_s9   ;;  %s438_s8 = sphi %s461_s8, %s641_s8   ;;  %s434_s7 = sphi %s459_s7, %s640_s7   ;;  %s430_s6 = sphi %s457_s6, %s639_s6  }
   0x6   : > { %s482_s12 = sadd.s32 1, %s442_s9   ;;  %s24_s13 = sadd.s32 1, %s438_s8 }
   0x7   : > { %s21_s14 = ssub.s32 %s442_s9, %s482_s12  ;;  %p31_p0 = scmp.ne.s32.totalorder %s438_s8, %s434_s7 }
   0x8   : > { %p22_p1 = scmp.eq.s32.totalorder %s21_s14, 0  ;;  %p32_p2 = scmp.eq.s32.totalorder %s442_s9, 0 }
   0x9   : > { %p37_p3 = scmp.ne.s32.totalorder %s434_s7, %s430_s6  ;;  %p38_p4 = scmp.eq.s32.totalorder %s478_s10, 0 }
   0xa   : > { %s494_s15 = scalar_select %p22_p1, %s438_s8, %s24_s13  }
   0xb   : > { %p496_p5 = por %p32_p2, %p31_p0  ;;  %p500_p6 = por %p38_p4, %p37_p3 }
   0xc   : > { %p61_p7 = scmp.eq.s32.totalorder %s478_s10, 1  ;;  %p67_p8 = scmp.eq.s32.totalorder %s278_s11, 1 }
   0xd   : > { %p306_p10 = scmp.lt.s32.totalorder %s442_s9, 2  ;;  %s87_s20 = sand.u32 1, %s438_s8  }
   0xe   : > { %p507_p11 = por %p61_p7, %p31_p0  ;;  %p511_p12 = por %p67_p8, %p37_p3 }
   0xf   : > { %s292_s21 = sshll.u32 %s442_s9, 7  ;;  %s281_s22 = sshll.u32 %s87_s20, 3 }
  0x10   : > { %s631_s18 = scalar_select %p507_p11, 1, 0 }
  0x11   : > { %s632_s19 = scalar_select %p511_p12, 1, 0 }
  0x12   : > { %s520_s25 = scalar_lea.hbm %s626_s0, %s292_s21  ;;  %s91_s26 = scalar_lea.vmem [#allocation2], %s281_s22 }
  0x13   : > { %s99_s27 = sshll.u32 %s91_s26, 4  ;;  %p524_p13 = pnand %p306_p10, %p496_p5  ;;  %s528_s27 = int_to_ptr.vmem [resolvable:$true] %s99_s27 }
  0x14   : > { %s88_s29 = scalar_lea.sflag [#allocation3], %s87_s20  ;;  %s346_s30 = scalar_lea.hbm %s520_s25, 128 }
  0x15   : > { %p347_p2 = scmp.ne.s32.totalorder %s520_s25, %s346_s30  ;;  %p348_p3 = pneg %p524_p13 }
  0x16   : > { %s351_s4 = scalar_lea.hbm %s626_s0, 256  ;;  %p352_p5 = scmp.lt.u32.totalorder %s520_s25, %s626_s0 }
  0x17   : > { %p349_p4 = pnand %p348_p3, %p347_p2  ;;  %p353_p8 = scmp.lt.u32.totalorder %s351_s4, %s346_s30 }
  0x18   : > { %p355_p9 = scmp.lt.u32.totalorder %s346_s30, %s520_s25 }
  0x19   : > { %p350_p7 = pneg %p349_p4  ;;  %p354_p10 = por %p353_p8, %p352_p5 }
  0x1b   : > { %p356_p0 = por %p355_p9, %p354_p10 }
  0x1d   : > { %p357_p1 = pnand %p356_p0, %p350_p7 }
  0x1f   : > { %360 = shalt.err (!%p357_p1)
}
  0x20   : > { %s361_s13 = scalar_lea.vmem %s528_s27, 128  ;;  %s444_s14 = smov [#allocation2]  }
  0x21   : > { %p362_p2 = scmp.ne.s32.totalorder %s528_s27, %s361_s13  ;;  %s366_s16 = sshll.u32 %s444_s14, 4  ;;  %s367_s16 = int_to_ptr.vmem [resolvable:$false] %s366_s16 }
  0x22   : > { %s368_s20 = scalar_lea.vmem %s367_s16, 256  ;;  %p369_p11 = scmp.lt.s32.totalorder %s528_s27, %s367_s16 }
  0x23   : > { %p364_p4 = pnand %p362_p2, %p348_p3  ;;  %p370_p5 = scmp.lt.s32.totalorder %s368_s20, %s361_s13 }
  0x25   : > { %p365_p12 = pneg %p364_p4  ;;  %p371_p8 = por %p370_p5, %p369_p11 }
  0x27   : > { %p372_p9 = pnand %p371_p8, %p365_p12 }
  0x29   : > { %375 = shalt.err (!%p372_p9)
}
  0x2a   : > { %301 = dma.hbm_to_vmem [thread:$0]  (!%p524_p13), %s520_s25, 128, %s528_s27, %s88_s29  }
  0x2b   : > { %p634_p0 = scmp.lt.s32.totalorder %s442_s9, 3  ;;  %p635_p1 = scmp.ge.s32.totalorder %s442_s9, 1 }
  0x2d   : > { %p105_p3 = pnand %p635_p1, %p634_p0 }
  0x2e   : > { %s562_s21 = sand.u32 (!%p105_p3), 1, %s434_s7  }
  0x2f   : > { %108 = sbr.rel (%p105_p3) target bundleno = 567 (0x237), region = 24  ;;  %s285_s22 = sshll.u32 (!%p105_p3), %s562_s21, 3 }
  0x30   : > { %s111_s23 = scalar_lea.sflag (!%p105_p3), [#allocation3], %s562_s21  ;;  %s114_s24 = scalar_lea.vmem (!%p105_p3), [#allocation2], %s285_s22 }
  0x36   : > { %421 = dma.done.wait (%p500_p6), %s111_s23, 128  }
  0x37   : > { %423 = vsyncadd (%p500_p6), %s111_s23, 4294967168  ;;  %vm137_vm0 = vcmask 1043456   ;;  %v133_v0 = vld [vmem:[%s114_s24] sm:$0xff]  ;;  %v445_v5 = vmov 839922192   ;;  %v148_v7 = vlaneseq  ;;  %vm168_vm1 = vcmask 3072  }
  0x38   : > { %v135_v1 = vcombine.high %v133_v0, %v133_v0  ;;  %v138_v2 = vsel %vm137_vm0, %v133_v0, 0.0  ;;  %v146_v6 = vunpack.c.l.s4 %v445_v5  ;;  %s293_s17 = sshll.u32 %s478_s10, 7  ;;  %s132_s25 = scalar_lea.vmem [#allocation5], %s285_s22 }
  0x39   : > { %v149_v9 = vshrl.u32 %v148_v7, 7  ;;  %s208_s26 = sshll.u32 %s132_s25, 4  ;;  %s582_s29 = scalar_lea.hbm %s627_s1, %s293_s17  ;;  %s584_s26 = int_to_ptr.vmem [resolvable:$true] %s208_s26 }
  0x3a   : > { %v139_v3 = vsel %vm137_vm0, %v135_v1, 0.0  ;;  %v147_v8 = vunpack.c.0.s8 %v146_v6  ;;  %s194_s30 = scalar_lea.sflag [#allocation4], %s562_s21  ;;  %s376_s2 = scalar_lea.vmem %s584_s26, 128 }
  0x3b   : > { %v140_v4 = vadd.f32 %v139_v3, %v138_v2  ;;  %p377_p6 = scmp.ne.s32.totalorder %s584_s26, %s376_s2  ;;  %p636_p11 = scmp.ne.s32.totalorder %s631_s18, 0 }
  0x3c   : > { %v150_v10 = vsub.s32 %v147_v8, %v149_v9  ;;  %s446_s10 = smov [#allocation5]  }
  0x3d   : > { %141 = vadd.xlane.f32.xlu0 %v140_v4  ;;  %p378_p12 = pnand %p377_p6, %p636_p11  ;;  %s380_s3 = sshll.u32 %s446_s10, 4  ;;  %s381_s3 = int_to_ptr.vmem [resolvable:$false] %s380_s3 }
  0x3e   : > { %s382_s4 = scalar_lea.vmem %s381_s3, 256  ;;  %p383_p7 = scmp.lt.s32.totalorder %s584_s26, %s381_s3 }
  0x3f   : > { %p379_p13 = pneg %p378_p12  ;;  %p384_p10 = scmp.lt.s32.totalorder %s382_s4, %s376_s2 }
  0x41   : > { %p385_p2 = por %p384_p10, %p383_p7 }
  0x43   : > { %p386_p4 = pnand %p385_p2, %p379_p13 }
  0xca   : > { %v142_v11 = vpop.xlane.xlu0 %141 }
  0xcb   : > { %v143_v12 = vmul.f32 0.00390625, %v142_v11 }
  0xcd   : > { %v151_v13 = vrot.slane %v143_v12, %v150_v10 }
  0xcf   : > { %v153_v14 = vsub.f32 %v133_v0, %v151_v13 }
  0xd1   : > { %v154_v15 = vmul.f32 %v153_v14, %v153_v14 }
  0xd3   : > { %v156_v16 = vcombine.high %v154_v15, %v154_v15  ;;  %v158_v17 = vsel %vm137_vm0, %v154_v15, 0.0 }
  0xd5   : > { %v159_v18 = vsel %vm137_vm0, %v156_v16, 0.0 }
  0xd6   : > { %v160_v19 = vadd.f32 %v159_v18, %v158_v17 }
  0xd8   : > { %161 = vadd.xlane.f32.xlu0 %v160_v19 }
 0x165   : > { %v162_v20 = vpop.xlane.xlu0 %161 }
 0x166   : > { %v163_v21 = vmul.f32 0.00390625, %v162_v20 }
 0x168   : > { %v164_v22 = vadd.f32 1e-05, %v163_v21 }
 0x16a   : > { %342 = vrsqrt.f32 %v164_v22 }
 0x174   : > { %v343_v23 = vpop.eup %342 }
 0x175   : > { %v166_v24 = vmul.f32 %v343_v23, %v163_v21 }
 0x177   : > { %v167_v25 = vmul.f32 %v343_v23, %v166_v24 }
 0x179   : > { %v169_v26 = vsel %vm168_vm1, %v167_v25, 0.0 }
 0x17a   : > { %170 = vadd.xlane.f32.xlu1 %v169_v26 }
 0x207   : > { %v171_v27 = vpop.xlane.xlu1 %170 }
 0x208   : > { %v172_v28 = vrot.slane %v171_v27, 4 }
 0x20a   : > { %v173_v29 = vadd.f32 %v172_v28, %v171_v27 }
 0x20c   : > { %v174_v30 = vrot.slane %v173_v29, 2 }
 0x20e   : > { %v175_v31 = vadd.f32 %v174_v30, %v173_v29 }
 0x210   : > { %v176_v32 = vrot.slane %v175_v31, 1 }
 0x212   : > { %v177_v33 = vadd.f32 %v176_v32, %v175_v31 }
 0x214   : > { %v178_v34 = vmul.f32 256.0, %v177_v33 }
 0x216   : > { %344 = vrsqrt.f32 %v178_v34 }
 0x220   : > { %v345_v35 = vpop.eup %344 }
 0x221   : > { %v180_v36 = vmin.f32 %v345_v35, 100000.0 }
 0x223   : > { %v181_v37 = vmul.f32 %v343_v23, %v180_v36 }
 0x225   : > { %v189_v38 = vrot.slane %v181_v37, %v150_v10 }
 0x227   : > { %v191_v39 = vmul.f32 %v189_v38, %v153_v14 }
 0x229   : > { %192 = vst [vmem:[%s132_s25] sm:$0xff] %v191_v39 }
 0x22a   : > { %389 = shalt.err (!%p386_p4)
}
 0x22b   : > { %s390_s5 = scalar_lea.hbm %s582_s29, 128  ;;  %s394_s14 = scalar_lea.hbm %s627_s1, 256 }
 0x22c   : > { %p391_p5 = scmp.ne.s32.totalorder %s582_s29, %s390_s5  ;;  %p395_p0 = scmp.lt.u32.totalorder %s582_s29, %s627_s1 }
 0x22d   : > { %p396_p1 = scmp.lt.u32.totalorder %s394_s14, %s390_s5  ;;  %p398_p6 = scmp.lt.u32.totalorder %s390_s5, %s582_s29 }
 0x22e   : > { %p392_p8 = pnand %p391_p5, %p636_p11 }
 0x22f   : > { %p397_p3 = por %p396_p1, %p395_p0 }
 0x230   : > { %p393_p9 = pneg %p392_p8 }
 0x231   : > { %p399_p12 = por %p398_p6, %p397_p3 }
 0x233   : > { %p400_p13 = pnand %p399_p12, %p393_p9 }
 0x235   : > { %403 = shalt.err (!%p400_p13)
}
 0x236   : > { %296 = dma.vmem_to_hbm [thread:$0]  (%p636_p11), %s584_s26, 128, %s582_s29, %s194_s30  }
 0x237 PF: > { %s220_s21 = sand.u32 1, %s430_s6   ;;  %p637_p7 = scmp.ne.s32.totalorder %s632_s19, 0 }
 0x238   : > { %p638_p10 = scmp.ge.s32.totalorder %s442_s9, 2  ;;  %s221_s22 = scalar_lea.sflag [#allocation4], %s220_s21 }
 0x23a   : > { %p303_p2 = pnand %p638_p10, %p637_p7 }
 0x23c   : > { %425 = dma.done.wait (!%p303_p2), %s221_s22, 128  }
 0x23d   : > { %427 = vsyncadd (!%p303_p2), %s221_s22, 4294967168  ;;  %p14_p4 = scmp.ge.s32.totalorder %s482_s12, 4   ;;  %s639_s6 = smov %s434_s7 }
 0x23e   : > { %s640_s7 = smov %s438_s8  ;;  %s641_s8 = smov %s494_s15 }
 0x23f   : > { %s642_s9 = smov %s482_s12  ;;  %16 = sbr.rel (!%p14_p4) target bundleno = 5 (0x5), region = 69 }
 0x246   :  { %226 = vsyncpa [#allocation3], 1 }
 0x247   :  { %228 = vsyncpa [#allocation3 + $0x1], 1 }
 0x248   :  { %229 = vsyncpa [#allocation4], 1 }
 0x249   :  { %231 = vsyncpa [#allocation4 + $0x1], 1 }

</bundles_post_ra>
